<compile_context>
chip_gen: v6e
topology: v6e:2x2x1
jax: 0.10.0
libtpu: 0.0.40
codegen_flags: <defaults>
</compile_context>

<pallas_src>
import functools

import jax
import jax.numpy as jnp
from jax.experimental import pallas as pl
from jax.experimental.pallas import tpu as pltpu

# ---------------- model dimensions (small, synthetic) ----------------
IN_F = 32
HID1 = 128
HID2 = 64
OUT_F = 16
OUT_PAD = 128          # lane-dense padded width of the final layer
BATCH = 16
MAX_TILE_B = 512       # batch tile cap if batch ever scales up


# ---------------- fused MLP forward kernel ----------------
def mlp_kernel(x_ref, w1_ref, b1_ref, w2_ref, b2_ref, w3_ref, b3_ref, o_ref):
    # x_ref:  (tile_b, IN_F)          (f32 or bf16, matches weight dtype)
    # w*_ref: (in, out)               pre-transposed / pre-padded in wrapper
    # b*_ref: (1, out)                always f32
    # o_ref:  (tile_b, OUT_PAD)       f32, lane-dense (128 lanes)
    x = x_ref[...]
    h1 = jnp.dot(x, w1_ref[...], preferred_element_type=jnp.float32) + b1_ref[...]
    h1 = jnp.maximum(h1, 0.0)                                   # ReLU (f32 VPU)
    h2 = jnp.dot(h1.astype(w2_ref.dtype), w2_ref[...],
                 preferred_element_type=jnp.float32) + b2_ref[...]
    h2 = jnp.maximum(h2, 0.0)                                   # ReLU (f32 VPU)
    y = jnp.dot(h2.astype(w3_ref.dtype), w3_ref[...],
                preferred_element_type=jnp.float32) + b3_ref[...]
    o_ref[...] = y.astype(o_ref.dtype)


# ---------------- one-time parameter preparation (hoisted layout work) -------
def prepare_params(params, use_bf16=False):
    """Convert PyTorch-layout (out,in) weights to kernel layout once.

    Returns (w1t, b1, w2t, b2, w3t_padded, b3_padded); call this ONCE, outside
    the per-step forward path.
    """
    (w1, b1), (w2, b2), (w3, b3) = params
    mxu_dtype = jnp.bfloat16 if use_bf16 else jnp.float32

    w1t = jnp.asarray(w1.T, mxu_dtype)                      # (IN_F, HID1)
    w2t = jnp.asarray(w2.T, mxu_dtype)                      # (HID1, HID2)
    # Pad the last layer to OUT_PAD lanes -> unmasked 128-lane stores.
    w3t = jnp.zeros((HID2, OUT_PAD), mxu_dtype).at[:, :OUT_F].set(
        w3.T.astype(mxu_dtype))                             # (HID2, OUT_PAD)

    b1r = jnp.asarray(b1, jnp.float32).reshape(1, HID1)
    b2r = jnp.asarray(b2, jnp.float32).reshape(1, HID2)
    b3r = jnp.zeros((1, OUT_PAD), jnp.float32).at[:, :OUT_F].set(
        jnp.asarray(b3, jnp.float32))
    return (w1t, b1r, w2t, b2r, w3t, b3r)


# ---------------- fused forward via Pallas ----------------
def pytorch_network_forward(x, prepared):
    """Fused Sequential(Linear,ReLU,Linear,ReLU,Linear) forward."""
    w1t, b1r, w2t, b2r, w3t, b3r = prepared
    B = x.shape[0]

    # Batch tiling: one grid step for small batches; large (>=512-row) tiles
    # if batch scales.  Fall back to a single whole-batch block if it does not
    # divide evenly (fine for this problem size).
    tile_b = B if B <= MAX_TILE_B else MAX_TILE_B
    if B % tile_b != 0:
        tile_b = B
    grid = (B // tile_b,)

    # Megacore sharding only pays off with real per-step work.
    semantics = ("parallel",) if grid[0] > 1 else ("arbitrary",)

    # MXU operands match the (possibly bf16) weight dtype; accumulation is f32.
    x = x.astype(w1t.dtype)

    full = lambda i: (0, 0)  # weights / biases stay resident across the grid

    itemsize = jnp.dtype(w1t.dtype).itemsize
    flops = 2 * B * (IN_F * HID1 + HID1 * HID2 + HID2 * OUT_PAD)
    bytes_accessed = (
        B * IN_F * itemsize                                   # x
        + (IN_F * HID1 + HID1 * HID2 + HID2 * OUT_PAD) * itemsize  # weights
        + (HID1 + HID2 + OUT_PAD) * 4                         # biases (f32)
        + B * OUT_PAD * 4                                     # output (f32)
    )

    out = pl.pallas_call(
        mlp_kernel,
        out_shape=jax.ShapeDtypeStruct((B, OUT_PAD), jnp.float32),
        grid_spec=pltpu.PrefetchScalarGridSpec(
            num_scalar_prefetch=0,
            grid=grid,
            in_specs=[
                pl.BlockSpec((tile_b, IN_F), lambda i: (i, 0)),   # x tile
                pl.BlockSpec((IN_F, HID1), full),                 # W1^T
                pl.BlockSpec((1, HID1), full),                    # b1
                pl.BlockSpec((HID1, HID2), full),                 # W2^T
                pl.BlockSpec((1, HID2), full),                    # b2
                pl.BlockSpec((HID2, OUT_PAD), full),              # W3^T (padded)
                pl.BlockSpec((1, OUT_PAD), full),                 # b3  (padded)
            ],
            out_specs=pl.BlockSpec((tile_b, OUT_PAD), lambda i: (i, 0)),
        ),
        compiler_params=pltpu.CompilerParams(
            dimension_semantics=semantics,
        ),
        cost_estimate=pl.CostEstimate(
            flops=flops, transcendentals=0, bytes_accessed=bytes_accessed),
    )(x, w1t, b1r, w2t, b2r, w3t, b3r)

    # Strip the lane padding (fuses under jit).
    return out[:, :OUT_F]


# ---------------- deterministic parameter init (PyTorch-style shapes) -------
def init_linear(key, out_f, in_f):
    # mimic nn.Linear default: U(-1/sqrt(in), 1/sqrt(in)) for W and b
    kw, kb = jax.random.split(key)
    bound = 1.0 / jnp.sqrt(jnp.float32(in_f))
    w = jax.random.uniform(kw, (out_f, in_f), jnp.float32, -bound, bound)
    b = jax.random.uniform(kb, (out_f,), jnp.float32, -bound, bound)
    return w, b


def reference_forward(x, params):
    (w1, b1), (w2, b2), (w3, b3) = params
    h = jnp.maximum(x @ w1.T + b1, 0.0)
    h = jnp.maximum(h @ w2.T + b2, 0.0)
    return h @ w3.T + b3


if __name__ == "__main__":
    key = jax.random.PRNGKey(0)
    kx, k1, k2, k3 = jax.random.split(key, 4)

    x = jax.random.normal(kx, (BATCH, IN_F), jnp.float32)
    params = (
        init_linear(k1, HID1, IN_F),
        init_linear(k2, HID2, HID1),
        init_linear(k3, OUT_F, HID2),
    )

    # One-time layout work (transpose / reshape / pad), hoisted out of forward.
    # Set use_bf16=True on v6e/v7x for the native bf16 MXU path (loosen the
    # allclose tolerance to ~1e-2 in that case).
    prepared = prepare_params(params, use_bf16=False)

    fwd = jax.jit(pytorch_network_forward)
    out = fwd(x, prepared)
    out = jax.block_until_ready(out)

    ref = reference_forward(x, params)
    assert out.shape == (BATCH, OUT_F)
    assert jnp.allclose(out, ref, atol=1e-5, rtol=1e-5)

    print("KERNEL_OK")
</pallas_src>

<mosaic_0001>
module attributes {stable_mosaic.version = 11 : i64} {
  func.func @mlp_kernel(%arg0: i32, %arg1: memref<16x32xf32, #tpu.memory_space<vmem>>, %arg2: memref<32x128xf32, #tpu.memory_space<vmem>>, %arg3: memref<1x128xf32, #tpu.memory_space<vmem>>, %arg4: memref<128x64xf32, #tpu.memory_space<vmem>>, %arg5: memref<1x64xf32, #tpu.memory_space<vmem>>, %arg6: memref<64x128xf32, #tpu.memory_space<vmem>>, %arg7: memref<1x128xf32, #tpu.memory_space<vmem>>, %arg8: memref<16x128xf32, #tpu.memory_space<vmem>>) attributes {dimension_semantics = [#tpu.dimension_semantics<arbitrary>], iteration_bounds = array<i64: 1>, scalar_prefetch = 0 : i64, scratch_operands = 0 : i64, tpu.core_type = #tpu.core_type<tc>, window_params = [{transform_indices = @transform_0, window_bounds = array<i64: 16, 32>}, {pipeline_mode = #tpu.pipeline_mode<synchronous>, transform_indices = @transform_1, window_bounds = array<i64: 32, 128>}, {pipeline_mode = #tpu.pipeline_mode<synchronous>, transform_indices = @transform_2, window_bounds = array<i64: 1, 128>}, {pipeline_mode = #tpu.pipeline_mode<synchronous>, transform_indices = @transform_3, window_bounds = array<i64: 128, 64>}, {pipeline_mode = #tpu.pipeline_mode<synchronous>, transform_indices = @transform_4, window_bounds = array<i64: 1, 64>}, {pipeline_mode = #tpu.pipeline_mode<synchronous>, transform_indices = @transform_5, window_bounds = array<i64: 64, 128>}, {pipeline_mode = #tpu.pipeline_mode<synchronous>, transform_indices = @transform_6, window_bounds = array<i64: 1, 128>}, {transform_indices = @transform_7, window_bounds = array<i64: 16, 128>}]} {
    %c0 = arith.constant 0 : index
    %c0_0 = arith.constant 0 : index
    %0 = vector.load %arg1[%c0, %c0_0] : memref<16x32xf32, #tpu.memory_space<vmem>>, vector<16x32xf32>
    %c0_1 = arith.constant 0 : index
    %c0_2 = arith.constant 0 : index
    %1 = vector.load %arg2[%c0_1, %c0_2] : memref<32x128xf32, #tpu.memory_space<vmem>>, vector<32x128xf32>
    %cst = arith.constant dense<0.000000e+00> : vector<16x128xf32>
    %2 = tpu.matmul %0, %1, %cst {dimension_numbers = #tpu.dot_dimension_numbers<[1], [0], [0], [1], [0, 0, 1, 1], [], []>} : vector<16x32xf32>, vector<32x128xf32>, vector<16x128xf32> -> vector<16x128xf32>
    %c0_3 = arith.constant 0 : index
    %c0_4 = arith.constant 0 : index
    %3 = vector.load %arg3[%c0_3, %c0_4] : memref<1x128xf32, #tpu.memory_space<vmem>>, vector<1x128xf32>
    %4 = vector.broadcast %3 : vector<1x128xf32> to vector<16x128xf32>
    %5 = arith.addf %2, %4 : vector<16x128xf32>
    %cst_5 = arith.constant 0.000000e+00 : f32
    %6 = vector.broadcast %cst_5 : f32 to vector<16x128xf32>
    %7 = arith.maximumf %5, %6 : vector<16x128xf32>
    %c0_6 = arith.constant 0 : index
    %c0_7 = arith.constant 0 : index
    %8 = vector.load %arg4[%c0_6, %c0_7] : memref<128x64xf32, #tpu.memory_space<vmem>>, vector<128x64xf32>
    %cst_8 = arith.constant dense<0.000000e+00> : vector<16x64xf32>
    %9 = tpu.matmul %7, %8, %cst_8 {dimension_numbers = #tpu.dot_dimension_numbers<[1], [0], [0], [1], [0, 0, 1, 1], [], []>} : vector<16x128xf32>, vector<128x64xf32>, vector<16x64xf32> -> vector<16x64xf32>
    %c0_9 = arith.constant 0 : index
    %c0_10 = arith.constant 0 : index
    %10 = vector.load %arg5[%c0_9, %c0_10] : memref<1x64xf32, #tpu.memory_space<vmem>>, vector<1x64xf32>
    %11 = vector.broadcast %10 : vector<1x64xf32> to vector<16x64xf32>
    %12 = arith.addf %9, %11 : vector<16x64xf32>
    %cst_11 = arith.constant 0.000000e+00 : f32
    %13 = vector.broadcast %cst_11 : f32 to vector<16x64xf32>
    %14 = arith.maximumf %12, %13 : vector<16x64xf32>
    %c0_12 = arith.constant 0 : index
    %c0_13 = arith.constant 0 : index
    %15 = vector.load %arg6[%c0_12, %c0_13] : memref<64x128xf32, #tpu.memory_space<vmem>>, vector<64x128xf32>
    %cst_14 = arith.constant dense<0.000000e+00> : vector<16x128xf32>
    %16 = tpu.matmul %14, %15, %cst_14 {dimension_numbers = #tpu.dot_dimension_numbers<[1], [0], [0], [1], [0, 0, 1, 1], [], []>} : vector<16x64xf32>, vector<64x128xf32>, vector<16x128xf32> -> vector<16x128xf32>
    %c0_15 = arith.constant 0 : index
    %c0_16 = arith.constant 0 : index
    %17 = vector.load %arg7[%c0_15, %c0_16] : memref<1x128xf32, #tpu.memory_space<vmem>>, vector<1x128xf32>
    %18 = vector.broadcast %17 : vector<1x128xf32> to vector<16x128xf32>
    %19 = arith.addf %16, %18 : vector<16x128xf32>
    %c0_17 = arith.constant 0 : index
    %c0_18 = arith.constant 0 : index
    %20 = vector.load %arg8[%c0_17, %c0_18] : memref<16x128xf32, #tpu.memory_space<vmem>>, vector<16x128xf32>
    tpu.vector_store %arg8[%c0_17, %c0_18], %19 {strides = array<i32>} : memref<16x128xf32, #tpu.memory_space<vmem>>, vector<16x128xf32>,
    return
  }
  func.func @transform_0(%arg0: i32) -> (i32, i32) {
    %c0_i32 = arith.constant 0 : i32
    %c0_i32_0 = arith.constant 0 : i32
    return %arg0, %c0_i32 : i32, i32
  }
  func.func @transform_1(%arg0: i32) -> (i32, i32) {
    %c0_i32 = arith.constant 0 : i32
    %c0_i32_0 = arith.constant 0 : i32
    %c0_i32_1 = arith.constant 0 : i32
    return %c0_i32, %c0_i32_0 : i32, i32
  }
  func.func @transform_2(%arg0: i32) -> (i32, i32) {
    %c0_i32 = arith.constant 0 : i32
    %c0_i32_0 = arith.constant 0 : i32
    %c0_i32_1 = arith.constant 0 : i32
    return %c0_i32, %c0_i32_0 : i32, i32
  }
  func.func @transform_3(%arg0: i32) -> (i32, i32) {
    %c0_i32 = arith.constant 0 : i32
    %c0_i32_0 = arith.constant 0 : i32
    %c0_i32_1 = arith.constant 0 : i32
    return %c0_i32, %c0_i32_0 : i32, i32
  }
  func.func @transform_4(%arg0: i32) -> (i32, i32) {
    %c0_i32 = arith.constant 0 : i32
    %c0_i32_0 = arith.constant 0 : i32
    %c0_i32_1 = arith.constant 0 : i32
    return %c0_i32, %c0_i32_0 : i32, i32
  }
  func.func @transform_5(%arg0: i32) -> (i32, i32) {
    %c0_i32 = arith.constant 0 : i32
    %c0_i32_0 = arith.constant 0 : i32
    %c0_i32_1 = arith.constant 0 : i32
    return %c0_i32, %c0_i32_0 : i32, i32
  }
  func.func @transform_6(%arg0: i32) -> (i32, i32) {
    %c0_i32 = arith.constant 0 : i32
    %c0_i32_0 = arith.constant 0 : i32
    %c0_i32_1 = arith.constant 0 : i32
    return %c0_i32, %c0_i32_0 : i32, i32
  }
  func.func @transform_7(%arg0: i32) -> (i32, i32) {
    %c0_i32 = arith.constant 0 : i32
    %c0_i32_0 = arith.constant 0 : i32
    return %arg0, %c0_i32 : i32, i32
  }
}

</mosaic_0001>

<bundles_post_ra>
// kernel: pytorch_network_forward.1
= control target key start
LH: loop header
LB: loop body
LE: loop exit
PB: predicated region body
PF: predicated region fallthrough
CT: control target
= control target key end

     0   :  { %vm40_vm0 = vcmask 261120   ;;  %s617_s0 = inlined_call_operand.vmem [shape: f32[16,32], index: 0, kind: input, shape index: {}]   ;;  %s618_s1 = inlined_call_operand.vmem [shape: f32[32,128], index: 1, kind: input, shape index: {}]   ;;  %s619_s2 = inlined_call_operand.vmem [shape: f32[1,128], index: 2, kind: input, shape index: {}]   ;;  %s620_s3 = inlined_call_operand.vmem [shape: f32[128,64], index: 3, kind: input, shape index: {}]   ;;  %s621_s4 = inlined_call_operand.vmem [shape: f32[1,64], index: 4, kind: input, shape index: {}]   ;;  %s622_s5 = inlined_call_operand.vmem [shape: f32[64,128], index: 5, kind: input, shape index: {}]   ;;  %s623_s6 = inlined_call_operand.vmem [shape: f32[1,128], index: 6, kind: input, shape index: {}]   ;;  %s624_s7 = inlined_call_operand.hbm [shape: f32[16,128], index: 7, kind: output, shape index: {}]  }
   0x1   :  { %v32_v0 = vld [vmem:[%s618_s1 + $0x18] sm:$0xff]  ;;  %v31_v1 = vld [vmem:[%s618_s1 + $0x10] sm:$0xff]  ;;  %v27_v2 = vld [vmem:[%s617_s0] sm:$0xff] }
   0x2   :  { %380 = vmatprep.subr.mxu0 %v32_v0  ;;  %v30_v3 = vld [vmem:[%s618_s1 + $0x8] sm:$0xff]  ;;  %388 = vmatprep.mubr.msk.f32.mxu0 %vm40_vm0, %v27_v2  ;;  %v139_v4 = vld [vmem:[%s620_s3 + $0x78] sm:$0xff]  ;;  %v138_v5 = vld [vmem:[%s620_s3 + $0x70] sm:$0xff] }
   0x3   :  { %381 = vmatpush3.msra.mxu0 %v32_v0  ;;  %391 = vmatprep.subr.mxu1 %v139_v4  ;;  %v29_v6 = vld [vmem:[%s618_s1] sm:$0xff]  ;;  %v137_v7 = vld [vmem:[%s620_s3 + $0x68] sm:$0xff] }
   0x4   :  { %382 = vmatprep.subr.mxu0 %v31_v1  ;;  %392 = vmatpush3.msra.mxu1 %v139_v4  ;;  %v28_v8 = vld [vmem:[%s617_s0 + $0x8] sm:$0xff]  ;;  %v136_v9 = vld [vmem:[%s620_s3 + $0x60] sm:$0xff] }
   0x5   :  { %383 = vmatpush3.msra.mxu0 %v31_v1  ;;  %393 = vmatprep.subr.mxu1 %v138_v5 }
   0x6   :  { %384 = vmatprep.subr.mxu0 %v30_v3  ;;  %394 = vmatpush3.msra.mxu1 %v138_v5 }
   0x7   :  { %385 = vmatpush3.msra.mxu0 %v30_v3 }
   0x8   :  { %12 = vsyncpa [#allocation3], 0  ;;  %386 = vmatprep.subr.mxu0 %v29_v6  ;;  %395 = vmatprep.subr.mxu1 %v137_v7  ;;  %v135_v10 = vld [vmem:[%s620_s3 + $0x58] sm:$0xff]  ;;  %v134_v11 = vld [vmem:[%s620_s3 + $0x50] sm:$0xff]  ;;  %vm239_vm1 = vcmask 523264  }
   0x9   :  { %387 = vmatpush3.msra.mxu0 %v29_v6  ;;  %396 = vmatpush3.msra.mxu1 %v137_v7  ;;  %v133_v12 = vld [vmem:[%s620_s3 + $0x48] sm:$0xff]  ;;  %v132_v13 = vld [vmem:[%s620_s3 + $0x40] sm:$0xff]  ;;  %v131_v14 = vld [vmem:[%s620_s3 + $0x38] sm:$0xff] }
   0xa   :  { %389 = vmatmul.mubr.msk.f32.vlgmr.msra.gmra.mxu0 %vm40_vm0, %v28_v8  ;;  %397 = vmatprep.subr.mxu1 %v136_v9  ;;  %v130_v15 = vld [vmem:[%s620_s3 + $0x30] sm:$0xff]  ;;  %v129_v16 = vld [vmem:[%s620_s3 + $0x28] sm:$0xff]  ;;  %v128_v17 = vld [vmem:[%s620_s3 + $0x20] sm:$0xff] }
   0xb   :  { %398 = vmatpush3.msra.mxu1 %v136_v9  ;;  %v127_v18 = vld [vmem:[%s620_s3 + $0x18] sm:$0xff]  ;;  %v126_v19 = vld [vmem:[%s620_s3 + $0x10] sm:$0xff]  ;;  %v125_v20 = vld [vmem:[%s620_s3 + $0x8] sm:$0xff] }
   0xc   :  { %399 = vmatprep.subr.mxu1 %v135_v10  ;;  %v124_v21 = vld [vmem:[%s620_s3] sm:$0xff]  ;;  %v231_v22 = vld [vmem:[%s622_s5 + $0x38] sm:$0xff]  ;;  %v230_v23 = vld [vmem:[%s622_s5 + $0x30] sm:$0xff] }
   0xd   :  { %400 = vmatpush3.msra.mxu1 %v135_v10  ;;  %426 = vmatprep.subr.mxu0 %v231_v22  ;;  %v229_v24 = vld [vmem:[%s622_s5 + $0x28] sm:$0xff]  ;;  %v228_v25 = vld [vmem:[%s622_s5 + $0x20] sm:$0xff]  ;;  %v227_v33 = vld [vmem:[%s622_s5 + $0x18] sm:$0xff] }
   0xe   :  { %401 = vmatprep.subr.mxu1 %v134_v11  ;;  %427 = vmatpush3.msra.mxu0 %v231_v22  ;;  %v339_v26 = vld [vmem:[%s619_s2] ss:$0 sm:$0xff]  ;;  %v226_v34 = vld [vmem:[%s622_s5 + $0x10] sm:$0xff]  ;;  %v225_v35 = vld [vmem:[%s622_s5 + $0x8] sm:$0xff] }
   0xf   :  { %402 = vmatpush3.msra.mxu1 %v134_v11  ;;  %428 = vmatprep.subr.mxu0 %v230_v23  ;;  %v224_v36 = vld [vmem:[%s622_s5] sm:$0xff]  ;;  %s470_s5 = smov [#allocation2]  }
  0x10   :  { %403 = vmatprep.subr.mxu1 %v133_v12  ;;  %429 = vmatpush3.msra.mxu0 %v230_v23  ;;  %v342_v37 = vld [vmem:[%s621_s4] ss:$0 sm:$0xff]  ;;  %s328_s15 = sshll.u32 %s470_s5, 4  ;;  %s329_s15 = int_to_ptr.vmem [resolvable:$true] %s328_s15 }
  0x11   :  { %404 = vmatpush3.msra.mxu1 %v133_v12  ;;  %430 = vmatprep.subr.mxu0 %v229_v24  ;;  %v343_v44 = vld [vmem:[%s623_s6] ss:$0 sm:$0xff]  ;;  %s448_s4 = scalar_lea.vmem %s329_s15, 256  ;;  %p453_p1 = scmp.lt.s32.totalorder %s329_s15, %s329_s15 }
  0x12   :  { %405 = vmatprep.subr.mxu1 %v132_v13  ;;  %431 = vmatpush3.msra.mxu0 %v229_v24  ;;  %p449_p0 = scmp.ne.s32.totalorder %s329_s15, %s448_s4  ;;  %p454_p2 = scmp.lt.s32.totalorder %s448_s4, %s448_s4 }
  0x13   :  { %406 = vmatpush3.msra.mxu1 %v132_v13  ;;  %432 = vmatprep.subr.mxu0 %v228_v25 }
  0x14   :  { %407 = vmatprep.subr.mxu1 %v131_v14  ;;  %433 = vmatpush3.msra.mxu0 %v228_v25  ;;  %p455_p3 = por %p454_p2, %p453_p1 }
  0x15   :  { %408 = vmatpush3.msra.mxu1 %v131_v14  ;;  %434 = vmatprep.subr.mxu0 %v227_v33 }
  0x16   :  { %409 = vmatprep.subr.mxu1 %v130_v15  ;;  %435 = vmatpush3.msra.mxu0 %v227_v33  ;;  %p456_p4 = pnand %p455_p3, %p449_p0 }
  0x17   :  { %410 = vmatpush3.msra.mxu1 %v130_v15  ;;  %436 = vmatprep.subr.mxu0 %v226_v34 }
  0x18   :  { %411 = vmatprep.subr.mxu1 %v129_v16  ;;  %437 = vmatpush3.msra.mxu0 %v226_v34 }
  0x19   :  { %412 = vmatpush3.msra.mxu1 %v129_v16  ;;  %438 = vmatprep.subr.mxu0 %v225_v35 }
  0x1a   :  { %413 = vmatprep.subr.mxu1 %v128_v17  ;;  %439 = vmatpush3.msra.mxu0 %v225_v35 }
  0x1b   :  { %414 = vmatpush3.msra.mxu1 %v128_v17  ;;  %440 = vmatprep.subr.mxu0 %v224_v36 }
  0x1c   :  { %415 = vmatprep.subr.mxu1 %v127_v18  ;;  %441 = vmatpush3.msra.mxu0 %v224_v36 }
  0x1d   :  { %416 = vmatpush3.msra.mxu1 %v127_v18 }
  0x1e   :  { %417 = vmatprep.subr.mxu1 %v126_v19 }
  0x1f   :  { %418 = vmatpush3.msra.mxu1 %v126_v19 }
  0x20   :  { %419 = vmatprep.subr.mxu1 %v125_v20 }
  0x21   :  { %420 = vmatpush3.msra.mxu1 %v125_v20 }
  0x22   :  { %421 = vmatprep.subr.mxu1 %v124_v21 }
  0x23   :  { %422 = vmatpush3.msra.mxu1 %v124_v21 }
  0xca   :  { %v390_v27 = vpop.f32.mrf.mxu0 }
  0xcb   :  { %v119_v28 = vadd.f32 %v390_v27, %v339_v26 }
  0xcc   :  { %v113_v29 = vpop.f32.mrf.mxu0 }
  0xcd   :  { %v114_v30 = vadd.f32 %v339_v26, %v113_v29  ;;  %v123_v32 = vmax.f32 %v119_v28, 0.0 }
  0xcf   :  { %v122_v31 = vmax.f32 %v114_v30, 0.0 }
  0xd1   :  { %423 = vmatprep.mubr.f32.mxu1 %v122_v31 }
  0xd2   :  { %424 = vmatmul.mubr.f32.vlgmr.msra.gmra.mxu1 %v123_v32 }
 0x192   :  { %v425_v38 = vpop.f32.mrf.mxu1 }
 0x193   :  { %v219_v39 = vadd.f32 %v425_v38, %v342_v37 }
 0x194   :  { %v213_v40 = vpop.f32.mrf.mxu1 }
 0x195   :  { %v214_v41 = vadd.f32 %v342_v37, %v213_v40  ;;  %v223_v43 = vmax.f32 %v219_v39, 0.0 }
 0x197   :  { %v222_v42 = vmax.f32 %v214_v41, 0.0 }
 0x199   :  { %442 = vmatprep.mubr.msk.f32.mxu0 %vm239_vm1, %v222_v42 }
 0x19a   :  { %443 = vmatmul.mubr.msk.f32.vlgmr.msra.gmra.mxu0 %vm239_vm1, %v223_v43 }
 0x25a   :  { %v444_v45 = vpop.f32.mrf.mxu0 }
 0x25b   :  { %v318_v46 = vadd.f32 %v444_v45, %v343_v44 }
 0x25c   :  { %v312_v47 = vpop.f32.mrf.mxu0 }
 0x25d   :  { %322 = vst [vmem:[#allocation2 + $0x8] sm:$0xff] %v318_v46  ;;  %v313_v48 = vadd.f32 %v343_v44, %v312_v47 }
 0x25f   :  { %321 = vst [vmem:[#allocation2] sm:$0xff] %v313_v48 }
 0x260   :  { %459 = shalt.err (!%p456_p4)
}
 0x261   :  { %s471_s16 = smov 128   ;;  %s472_s17 = smov 8  }
 0x262   :  { %334 = dma.vmem_to_hbm [thread:$0]  %s329_s15, 256, %s624_s7, [#allocation3], %s471_s16, %s471_s16, %s472_s17  }
 0x263   :  { %468 = dma.done.wait [#allocation3], 256  }
 0x264   :  { %469 = vsyncadd [#allocation3], 4294967040 }
 0x265   :  { %338 = vsyncpa [#allocation3], 1 }

</bundles_post_ra>
